<compile_context>
chip_gen: v7x
topology: tpu7x:2x2x1
jax: 0.10.0
libtpu: 0.0.40
codegen_flags: <defaults>
</compile_context>

<pallas_src>
import jax
import jax.numpy as jnp
from jax.experimental import pallas as pl
from jax.experimental.pallas import tpu as pltpu

_LANE = 128  # lane width / MXU alignment


def _round_up(n, m):
    return ((n + m - 1) // m) * m


# ---------------------------------------------------------------------------
# Kernel body: three accumulating MXU dots (bf16 x bf16 -> f32) + fused bias.
# ---------------------------------------------------------------------------
def exg_kernel(x_ref, h_ref, g_ref, wx_ref, wh_ref, wg_ref, b_ref, o_ref):
    cd = wx_ref.dtype  # compute dtype (bf16); activation cast happens on-chip
    acc = jnp.dot(x_ref[...].astype(cd), wx_ref[...],
                  preferred_element_type=jnp.float32)
    acc += jnp.dot(h_ref[...].astype(cd), wh_ref[...],
                   preferred_element_type=jnp.float32)
    acc += jnp.dot(g_ref[...].astype(cd), wg_ref[...],
                   preferred_element_type=jnp.float32)
    acc += b_ref[...]  # (1, tn) f32, broadcasts over the batch tile
    o_ref[...] = acc.astype(o_ref.dtype)


# ---------------------------------------------------------------------------
# One-time parameter preparation (do NOT call per forward step).
# ---------------------------------------------------------------------------
def prepare_exg_params(wx, wh, wg, bx, bh, bg, *, compute_dtype=jnp.bfloat16):
    """wx:(out,x_size) wh:(out,h_size) wg:(out,g_size)  (PyTorch Linear layout).

    Returns ((wx_p, wh_p, wg_p, b_fused), out_size) where each w*_p is
    (k_i, n_pad) in compute_dtype and b_fused is (1, n_pad) float32.
    """
    out_size = wx.shape[0]
    n_pad = _round_up(out_size, _LANE)

    def prep_w(w):
        wt = jnp.asarray(w).T                                 # (k_i, out)
        wt = jnp.pad(wt, ((0, 0), (0, n_pad - out_size)))     # lane-dense N
        return wt.astype(compute_dtype)

    b = (bx + bh + bg).astype(jnp.float32)
    b = jnp.pad(b, (0, n_pad - out_size)).reshape(1, n_pad)
    return (prep_w(wx), prep_w(wh), prep_w(wg), b), out_size


# ---------------------------------------------------------------------------
# Tiling heuristics.
# ---------------------------------------------------------------------------
def _pick_tm(batch, tm_cap=512):
    """Batch tile: multiple of 8, minimal padded rows + per-step overhead,
    prefer >=2 tiles when batch permits (v7x megacore sharding)."""
    b8 = _round_up(batch, 8)
    best = None
    for cand in (512, 256, 128, 64, 32, 16, 8):
        if cand > tm_cap:
            continue
        tm = min(cand, b8)
        b_pad = _round_up(batch, tm)
        n_tiles = b_pad // tm
        cost = b_pad + 8 * n_tiles              # padded rows + fixed grid-step cost
        single = 1 if (n_tiles == 1 and b8 >= 16) else 0
        key = (single, cost, -tm)
        if best is None or key < best[0]:
            best = (key, tm, b_pad)
    return best[1], best[2]


def _pick_tn(n_pad, k_total, w_itemsize, budget_bytes=24 << 20):
    """N tile: whole N if the weight slab fits the budget (keeps weights
    resident, single-buffered); otherwise halve while staying a 128-multiple
    divisor of n_pad (weights then stream along an inner N grid axis)."""
    tn = n_pad
    while tn > _LANE and k_total * tn * w_itemsize > budget_bytes:
        half = tn // 2
        if half % _LANE == 0 and n_pad % half == 0:
            tn = half
        else:
            break
    return tn


_HAS_BUFFERED = hasattr(pl, "Buffered")


def _spec(block_shape, index_map, single_buffered=False):
    if single_buffered and _HAS_BUFFERED:
        try:
            return pl.BlockSpec(block_shape, index_map,
                                pipeline_mode=pl.Buffered(1))
        except TypeError:  # older jax without pipeline_mode kwarg
            pass
    return pl.BlockSpec(block_shape, index_map)


# ---------------------------------------------------------------------------
# Forward pass.
# ---------------------------------------------------------------------------
def exg_forward(x, h, g, params, out_size, *, out_dtype=jnp.float32,
                tm_cap=512):
    """x:(B,x_size) h:(B,h_size) g:(B,g_size) -> (B, out_size) in out_dtype."""
    wx_p, wh_p, wg_p, b_fused = params
    kx, kh, kg = wx_p.shape[0], wh_p.shape[0], wg_p.shape[0]
    n_pad = wx_p.shape[1]
    k_total = kx + kh + kg
    w_itemsize = jnp.dtype(wx_p.dtype).itemsize
    B = x.shape[0]

    tm, b_pad = _pick_tm(B, tm_cap)
    tn = _pick_tn(n_pad, k_total, w_itemsize)
    nb, nn = b_pad // tm, n_pad // tn
    weights_resident = (nn == 1)   # grid-invariant -> single VMEM copy

    # Only pad the batch if needed (tm selection keeps waste small).
    if b_pad != B:
        pad = ((0, b_pad - B), (0, 0))
        x, h, g = jnp.pad(x, pad), jnp.pad(h, pad), jnp.pad(g, pad)

    # Explicit VMEM budget: double-buffered activation & output tiles +
    # weight/bias copies (1 when resident, 2 when streamed along N).
    act_item = jnp.dtype(x.dtype).itemsize
    out_item = jnp.dtype(out_dtype).itemsize
    w_copies = 1 if weights_resident else 2
    need = (2 * tm * k_total * act_item
            + w_copies * (k_total * tn * w_itemsize + tn * 4)
            + 2 * tm * tn * out_item)
    vmem_limit = min(96 << 20, max(int(1.5 * need) + (2 << 20), 16 << 20))

    out = pl.pallas_call(
        exg_kernel,
        out_shape=jax.ShapeDtypeStruct((b_pad, n_pad), out_dtype),
        grid_spec=pltpu.PrefetchScalarGridSpec(
            num_scalar_prefetch=0,
            grid=(nb, nn),
            in_specs=[
                # Activation tiles stream along the batch axis (double
                # buffered); reused (no re-DMA) across inner N tiles.
                pl.BlockSpec((tm, kx), lambda i, j: (i, 0)),
                pl.BlockSpec((tm, kh), lambda i, j: (i, 0)),
                pl.BlockSpec((tm, kg), lambda i, j: (i, 0)),
                # Weights + bias: VMEM-resident, single-buffered when nn == 1.
                _spec((kx, tn), lambda i, j: (0, j), weights_resident),
                _spec((kh, tn), lambda i, j: (0, j), weights_resident),
                _spec((kg, tn), lambda i, j: (0, j), weights_resident),
                _spec((1, tn), lambda i, j: (0, j), weights_resident),
            ],
            out_specs=pl.BlockSpec((tm, tn), lambda i, j: (i, j)),
        ),
        compiler_params=pltpu.CompilerParams(
            # Both axes independent: batch shards across TensorCores (v7x).
            dimension_semantics=("parallel", "parallel"),
            vmem_limit_bytes=vmem_limit,
        ),
    )(x, h, g, wx_p, wh_p, wg_p, b_fused)

    # Drop batch / lane padding outside the kernel (cheap slice).
    return out[:B, :out_size]


def init_linear_params(key, in_features, out_features):
    # Deterministic init mimicking nn.Linear (uniform +-1/sqrt(in_features)).
    kw, kb = jax.random.split(key)
    bound = 1.0 / jnp.sqrt(jnp.float32(in_features))
    w = jax.random.uniform(kw, (out_features, in_features), jnp.float32,
                           minval=-bound, maxval=bound)
    b = jax.random.uniform(kb, (out_features,), jnp.float32,
                           minval=-bound, maxval=bound)
    return w, b


if __name__ == "__main__":
    # Small, module-consistent shapes.
    batch = 8
    x_size, h_size, g_size, out_size = 16, 32, 24, 32

    key = jax.random.PRNGKey(0)
    kx, kh, kg, kpx, kph, kpg = jax.random.split(key, 6)

    x = jax.random.normal(kx, (batch, x_size), jnp.float32)
    h = jax.random.normal(kh, (batch, h_size), jnp.float32)
    g = jax.random.normal(kg, (batch, g_size), jnp.float32)

    wx, bx = init_linear_params(kpx, x_size, out_size)
    wh, bh = init_linear_params(kph, h_size, out_size)
    wg, bg = init_linear_params(kpg, g_size, out_size)

    # One-time parameter preparation (transpose + N-pad + bf16 cast + bias fuse).
    params, out_sz = prepare_exg_params(wx, wh, wg, bx, bh, bg)

    out = exg_forward(x, h, g, params, out_sz)
    jax.block_until_ready(out)

    # Reference in plain JAX f32 (same semantics as the PyTorch module).
    ref = (x @ wx.T + bx) + (h @ wh.T + bh) + (g @ wg.T + bg)
    assert out.shape == (batch, out_size)
    # Loose tolerance: kernel uses bf16 matmul operands with f32 accumulation.
    assert jnp.allclose(out, ref, atol=5e-2, rtol=5e-2), "mismatch vs reference"

    print("KERNEL_OK")
</pallas_src>

<mosaic_0001>
module attributes {stable_mosaic.version = 11 : i64} {
  func.func @exg_kernel(%arg0: i32, %arg1: i32, %arg2: memref<8x16xf32, #tpu.memory_space<vmem>>, %arg3: memref<8x32xf32, #tpu.memory_space<vmem>>, %arg4: memref<8x24xf32, #tpu.memory_space<vmem>>, %arg5: memref<16x128xbf16, #tpu.memory_space<vmem>>, %arg6: memref<32x128xbf16, #tpu.memory_space<vmem>>, %arg7: memref<24x128xbf16, #tpu.memory_space<vmem>>, %arg8: memref<1x128xf32, #tpu.memory_space<vmem>>, %arg9: memref<8x128xf32, #tpu.memory_space<vmem>>) attributes {dimension_semantics = [#tpu.dimension_semantics<parallel>, #tpu.dimension_semantics<parallel>], iteration_bounds = array<i64: 1, 1>, scalar_prefetch = 0 : i64, scratch_operands = 0 : i64, tpu.core_type = #tpu.core_type<tc>, window_params = [{transform_indices = @transform_0, window_bounds = array<i64: 8, 16>}, {transform_indices = @transform_1, window_bounds = array<i64: 8, 32>}, {transform_indices = @transform_2, window_bounds = array<i64: 8, 24>}, {pipeline_mode = #tpu.pipeline_mode<synchronous>, transform_indices = @transform_3, window_bounds = array<i64: 16, 128>}, {pipeline_mode = #tpu.pipeline_mode<synchronous>, transform_indices = @transform_4, window_bounds = array<i64: 32, 128>}, {pipeline_mode = #tpu.pipeline_mode<synchronous>, transform_indices = @transform_5, window_bounds = array<i64: 24, 128>}, {pipeline_mode = #tpu.pipeline_mode<synchronous>, transform_indices = @transform_6, window_bounds = array<i64: 1, 128>}, {transform_indices = @transform_7, window_bounds = array<i64: 8, 128>}]} {
    %c0 = arith.constant 0 : index
    %c0_0 = arith.constant 0 : index
    %0 = vector.load %arg2[%c0, %c0_0] : memref<8x16xf32, #tpu.memory_space<vmem>>, vector<8x16xf32>
    %1 = arith.truncf %0 : vector<8x16xf32> to vector<8x16xbf16>
    %c0_1 = arith.constant 0 : index
    %c0_2 = arith.constant 0 : index
    %2 = vector.load %arg5[%c0_1, %c0_2] : memref<16x128xbf16, #tpu.memory_space<vmem>>, vector<16x128xbf16>
    %cst = arith.constant dense<0.000000e+00> : vector<8x128xf32>
    %3 = tpu.matmul %1, %2, %cst {dimension_numbers = #tpu.dot_dimension_numbers<[1], [0], [0], [1], [0, 0, 1, 1], [], []>} : vector<8x16xbf16>, vector<16x128xbf16>, vector<8x128xf32> -> vector<8x128xf32>
    %c0_3 = arith.constant 0 : index
    %c0_4 = arith.constant 0 : index
    %4 = vector.load %arg3[%c0_3, %c0_4] : memref<8x32xf32, #tpu.memory_space<vmem>>, vector<8x32xf32>
    %5 = arith.truncf %4 : vector<8x32xf32> to vector<8x32xbf16>
    %c0_5 = arith.constant 0 : index
    %c0_6 = arith.constant 0 : index
    %6 = vector.load %arg6[%c0_5, %c0_6] : memref<32x128xbf16, #tpu.memory_space<vmem>>, vector<32x128xbf16>
    %cst_7 = arith.constant dense<0.000000e+00> : vector<8x128xf32>
    %7 = tpu.matmul %5, %6, %cst_7 {dimension_numbers = #tpu.dot_dimension_numbers<[1], [0], [0], [1], [0, 0, 1, 1], [], []>} : vector<8x32xbf16>, vector<32x128xbf16>, vector<8x128xf32> -> vector<8x128xf32>
    %8 = arith.addf %3, %7 : vector<8x128xf32>
    %c0_8 = arith.constant 0 : index
    %c0_9 = arith.constant 0 : index
    %9 = vector.load %arg4[%c0_8, %c0_9] : memref<8x24xf32, #tpu.memory_space<vmem>>, vector<8x24xf32>
    %10 = arith.truncf %9 : vector<8x24xf32> to vector<8x24xbf16>
    %c0_10 = arith.constant 0 : index
    %c0_11 = arith.constant 0 : index
    %11 = vector.load %arg7[%c0_10, %c0_11] : memref<24x128xbf16, #tpu.memory_space<vmem>>, vector<24x128xbf16>
    %cst_12 = arith.constant dense<0.000000e+00> : vector<8x128xf32>
    %12 = tpu.matmul %10, %11, %cst_12 {dimension_numbers = #tpu.dot_dimension_numbers<[1], [0], [0], [1], [0, 0, 1, 1], [], []>} : vector<8x24xbf16>, vector<24x128xbf16>, vector<8x128xf32> -> vector<8x128xf32>
    %13 = arith.addf %8, %12 : vector<8x128xf32>
    %c0_13 = arith.constant 0 : index
    %c0_14 = arith.constant 0 : index
    %14 = vector.load %arg8[%c0_13, %c0_14] : memref<1x128xf32, #tpu.memory_space<vmem>>, vector<1x128xf32>
    %15 = vector.broadcast %14 : vector<1x128xf32> to vector<8x128xf32>
    %16 = arith.addf %13, %15 : vector<8x128xf32>
    %c0_15 = arith.constant 0 : index
    %c0_16 = arith.constant 0 : index
    %17 = vector.load %arg9[%c0_15, %c0_16] : memref<8x128xf32, #tpu.memory_space<vmem>>, vector<8x128xf32>
    tpu.vector_store %arg9[%c0_15, %c0_16], %16 {strides = array<i32>} : memref<8x128xf32, #tpu.memory_space<vmem>>, vector<8x128xf32>,
    return
  }
  func.func @transform_0(%arg0: i32, %arg1: i32) -> (i32, i32) {
    %c0_i32 = arith.constant 0 : i32
    %c0_i32_0 = arith.constant 0 : i32
    return %arg0, %c0_i32 : i32, i32
  }
  func.func @transform_1(%arg0: i32, %arg1: i32) -> (i32, i32) {
    %c0_i32 = arith.constant 0 : i32
    %c0_i32_0 = arith.constant 0 : i32
    return %arg0, %c0_i32 : i32, i32
  }
  func.func @transform_2(%arg0: i32, %arg1: i32) -> (i32, i32) {
    %c0_i32 = arith.constant 0 : i32
    %c0_i32_0 = arith.constant 0 : i32
    return %arg0, %c0_i32 : i32, i32
  }
  func.func @transform_3(%arg0: i32, %arg1: i32) -> (i32, i32) {
    %c0_i32 = arith.constant 0 : i32
    %c0_i32_0 = arith.constant 0 : i32
    return %c0_i32, %arg1 : i32, i32
  }
  func.func @transform_4(%arg0: i32, %arg1: i32) -> (i32, i32) {
    %c0_i32 = arith.constant 0 : i32
    %c0_i32_0 = arith.constant 0 : i32
    return %c0_i32, %arg1 : i32, i32
  }
  func.func @transform_5(%arg0: i32, %arg1: i32) -> (i32, i32) {
    %c0_i32 = arith.constant 0 : i32
    %c0_i32_0 = arith.constant 0 : i32
    return %c0_i32, %arg1 : i32, i32
  }
  func.func @transform_6(%arg0: i32, %arg1: i32) -> (i32, i32) {
    %c0_i32 = arith.constant 0 : i32
    %c0_i32_0 = arith.constant 0 : i32
    return %c0_i32, %arg1 : i32, i32
  }
  func.func @transform_7(%arg0: i32, %arg1: i32) -> (i32, i32) {
    %c0_i32 = arith.constant 0 : i32
    return %arg0, %arg1 : i32, i32
  }
}

</mosaic_0001>

<bundles_post_ra>
// kernel: tpu_custom_call.1
= control target key start
LH: loop header
LB: loop body
LE: loop exit
PB: predicated region body
PF: predicated region fallthrough
CT: control target
= control target key end

     0   :  { %12 = vsyncpa [#allocation3], 0  ;;  %s636_s0 = inlined_call_operand.hbm [shape: f32[8,16], index: 0, kind: input, shape index: {}]   ;;  %s637_s1 = inlined_call_operand.hbm [shape: f32[8,32], index: 1, kind: input, shape index: {}]   ;;  %s638_s2 = inlined_call_operand.hbm [shape: f32[8,24], index: 2, kind: input, shape index: {}]   ;;  %s639_s3 = inlined_call_operand.hbm [shape: bf16[16,128], index: 3, kind: input, shape index: {}]   ;;  %s640_s4 = inlined_call_operand.hbm [shape: bf16[32,128], index: 4, kind: input, shape index: {}]   ;;  %s641_s5 = inlined_call_operand.vmem [shape: bf16[24,128], index: 5, kind: input, shape index: {}]   ;;  %s642_s6 = inlined_call_operand.vmem [shape: f32[1,128], index: 6, kind: input, shape index: {}]   ;;  %s643_s7 = inlined_call_operand.hbm [shape: f32[8,128], index: 7, kind: output, shape index: {}]  }
   0x1   :  { %13 = vsyncpa [#allocation6], 0 }
   0x2   :  { %14 = vsyncpa [#allocation9], 0 }
   0x3   :  { %15 = vsyncpa [#allocation4], 0  ;;  %s489_s24 = smov [#allocation5]   ;;  %s490_s26 = smov [#allocation8]  }
   0x4   :  { %s32_s25 = sshll.u32 %s489_s24, 4  ;;  %s51_s27 = sshll.u32 %s490_s26, 4  ;;  %s33_s25 = int_to_ptr.vmem [resolvable:$true] %s32_s25  ;;  %s539_s27 = int_to_ptr.vmem [resolvable:$true] %s51_s27 }
   0x5   :  { %s349_s30 = scalar_lea.hbm %s637_s1, 128 }
   0x6   :  { %p350_p0 = scmp.ne.s32.totalorder %s637_s1, %s349_s30  ;;  %p353_p1 = scmp.lt.u32.totalorder %s349_s30, %s637_s1 }
   0x8   :  { %p355_p2 = pnand %p353_p1, %p350_p0 }
   0xa   :  { %358 = shalt.err (!%p355_p2)
}
   0xb   :  { %s359_s12 = scalar_lea.vmem %s33_s25, 128  ;;  %p364_p4 = scmp.lt.s32.totalorder %s33_s25, %s33_s25 }
   0xc   :  { %p360_p3 = scmp.ne.s32.totalorder %s33_s25, %s359_s12  ;;  %p365_p5 = scmp.lt.s32.totalorder %s359_s12, %s359_s12 }
   0xe   :  { %p366_p6 = por %p365_p5, %p364_p4 }
  0x10   :  { %p367_p7 = pnand %p366_p6, %p360_p3 }
  0x12   :  { %370 = shalt.err (!%p367_p7)
}
  0x13   :  { %35 = dma.hbm_to_vmem [thread:$0]  %s637_s1, 128, %s33_s25, [#allocation6]  }
  0x14   :  { %s371_s17 = scalar_lea.hbm %s639_s3, 128 }
  0x15   :  { %p372_p8 = scmp.ne.s32.totalorder %s639_s3, %s371_s17  ;;  %p375_p9 = scmp.lt.u32.totalorder %s371_s17, %s639_s3 }
  0x17   :  { %p377_p10 = pnand %p375_p9, %p372_p8 }
  0x19   :  { %380 = shalt.err (!%p377_p10)
}
  0x1a   :  { %s381_s22 = scalar_lea.vmem %s539_s27, 128  ;;  %p386_p12 = scmp.lt.s32.totalorder %s539_s27, %s539_s27 }
  0x1b   :  { %p382_p11 = scmp.ne.s32.totalorder %s539_s27, %s381_s22  ;;  %p387_p13 = scmp.lt.s32.totalorder %s381_s22, %s381_s22 }
  0x1d   :  { %p388_p0 = por %p387_p13, %p386_p12 }
  0x1f   :  { %p389_p1 = pnand %p388_p0, %p382_p11 }
  0x21   :  { %392 = shalt.err (!%p389_p1)
}
  0x22   :  { %s491_s1 = smov 64   ;;  %s492_s23 = smov 4  }
  0x23   :  { %57 = dma.hbm_to_vmem [thread:$0]  %s639_s3, 128, %s539_s27, [#allocation9], %s491_s1, %s491_s1, %s492_s23  }
  0x24   :  { %s493_s26 = smov [#allocation2]   ;;  %s494_s29 = smov [#allocation7]  }
  0x25   :  { %s22_s28 = sshll.u32 %s493_s26, 4  ;;  %s42_s30 = sshll.u32 %s494_s29, 4  ;;  %s23_s28 = int_to_ptr.vmem [resolvable:$true] %s22_s28  ;;  %s43_s30 = int_to_ptr.vmem [resolvable:$true] %s42_s30 }
  0x26   :  { %s393_s10 = scalar_lea.hbm %s636_s0, 128 }
  0x27   :  { %p394_p2 = scmp.ne.s32.totalorder %s636_s0, %s393_s10  ;;  %p397_p3 = scmp.lt.u32.totalorder %s393_s10, %s636_s0 }
  0x29   :  { %p399_p4 = pnand %p397_p3, %p394_p2 }
  0x2b   :  { %402 = shalt.err (!%p399_p4)
}
  0x2c   :  { %s403_s3 = scalar_lea.vmem %s23_s28, 128  ;;  %p408_p6 = scmp.lt.s32.totalorder %s23_s28, %s23_s28 }
  0x2d   :  { %p404_p5 = scmp.ne.s32.totalorder %s23_s28, %s403_s3  ;;  %p409_p7 = scmp.lt.s32.totalorder %s403_s3, %s403_s3 }
  0x2f   :  { %p410_p8 = por %p409_p7, %p408_p6 }
  0x31   :  { %p411_p9 = pnand %p410_p8, %p404_p5 }
  0x33   :  { %414 = shalt.err (!%p411_p9)
}
  0x34   :  { %25 = dma.hbm_to_vmem [thread:$0]  %s636_s0, 128, %s23_s28, [#allocation3]  }
  0x35   :  { %s415_s18 = scalar_lea.hbm %s638_s2, 128 }
  0x36   :  { %p416_p10 = scmp.ne.s32.totalorder %s638_s2, %s415_s18  ;;  %p419_p11 = scmp.lt.u32.totalorder %s415_s18, %s638_s2 }
  0x38   :  { %p421_p12 = pnand %p419_p11, %p416_p10 }
  0x3a   :  { %424 = shalt.err (!%p421_p12)
}
  0x3b   :  { %s425_s24 = scalar_lea.vmem %s43_s30, 128  ;;  %p430_p0 = scmp.lt.s32.totalorder %s43_s30, %s43_s30 }
  0x3c   :  { %p426_p13 = scmp.ne.s32.totalorder %s43_s30, %s425_s24  ;;  %p431_p1 = scmp.lt.s32.totalorder %s425_s24, %s425_s24 }
  0x3e   :  { %p432_p2 = por %p431_p1, %p430_p0 }
  0x40   :  { %p433_p3 = pnand %p432_p2, %p426_p13 }
  0x42   :  { %436 = shalt.err (!%p433_p3)
}
  0x43   :  { %45 = dma.hbm_to_vmem [thread:$0]  %s638_s2, 128, %s43_s30, [#allocation6]  }
  0x44   :  { %s495_s26 = smov [#allocation10]   ;;  %s437_s9 = scalar_lea.hbm %s640_s4, 256 }
  0x45   :  { %s63_s28 = sshll.u32 %s495_s26, 4  ;;  %p438_p4 = scmp.ne.s32.totalorder %s640_s4, %s437_s9  ;;  %s64_s28 = int_to_ptr.vmem [resolvable:$true] %s63_s28 }
  0x46   :  { %p441_p5 = scmp.lt.u32.totalorder %s437_s9, %s640_s4 }
  0x48   :  { %p443_p6 = pnand %p441_p5, %p438_p4 }
  0x4a   :  { %446 = shalt.err (!%p443_p6)
}
  0x4b   :  { %s447_s14 = scalar_lea.vmem %s64_s28, 256  ;;  %p452_p8 = scmp.lt.s32.totalorder %s64_s28, %s64_s28 }
  0x4c   :  { %p448_p7 = scmp.ne.s32.totalorder %s64_s28, %s447_s14  ;;  %p453_p9 = scmp.lt.s32.totalorder %s447_s14, %s447_s14 }
  0x4e   :  { %p454_p10 = por %p453_p9, %p452_p8 }
  0x50   :  { %p455_p11 = pnand %p454_p10, %p448_p7 }
  0x52   :  { %458 = shalt.err (!%p455_p11)
}
  0x53   :  { %69 = dma.hbm_to_vmem [thread:$0]  %s640_s4, 256, %s64_s28, [#allocation9], %s491_s1, %s491_s1, %s492_s23  }
  0x54   :  { %481 = dma.done.wait [#allocation3], 128  }
  0x55   :  { %482 = vsyncadd [#allocation3], 4294967168 }
  0x56   :  { %483 = dma.done.wait [#allocation6], 256  }
  0x57   :  { %484 = vsyncadd [#allocation6], 4294967040 }
  0x58   :  { %485 = dma.done.wait [#allocation9], 384  }
  0x59   :  { %486 = vsyncadd [#allocation9], 4294966912  ;;  %v496_v0 = vmov 0.0   ;;  %vm497_vm0 = vmmov 0   ;;  %v344_v1 = vld [vmem:[#allocation10] sm:$0xff]   ;;  %v345_v2 = vld [vmem:[#allocation8] sm:$0xff]  }
  0x5a   :  { %312 = vmatprep.subr.bf16.mxu0 %v496_v0  ;;  %320 = vmatprep.subr.bf16.mxu1 %v496_v0  ;;  %v90_v3 = vld [vmem:[#allocation2] sm:$0xff]  ;;  %vm162_vm1 = vcmask 130048   ;;  %v346_v5 = vld [vmem:[#allocation10 + $0x8] sm:$0xff]   ;;  %v347_v6 = vld [vmem:[%s641_s5] sm:$0xff]   ;;  %vm224_vm2 = vcmask 1043456   ;;  %vm112_vm3 = vcmask 261120  }
  0x5b   :  { %322 = vmatprep.mubr.msk.bf16.mxu1 %vm497_vm0, %v496_v0  ;;  %316 = vmatprep.mubr.msk.bf16.mxu0 %vm497_vm0, %v496_v0  ;;  %v91_v4 = vpack.c.bf16 %v90_v3, %v90_v3  ;;  %v94_v7 = vld [vmem:[#allocation5] sm:$0xff]  ;;  %v348_v9 = vld [vmem:[%s641_s5 + $0x8] ss:$0 sps:$4 sm:$0xff]   ;;  %v206_v10 = vld [vmem:[#allocation7] sm:$0xff]  ;;  %vm220_vm4 = vcmask 195584   ;;  %s498_s15 = smov [#allocation11]  }
  0x5c   :  { %313 = vmatpush3.bf16.msra.mxu0 %v344_v1  ;;  %321 = vmatpush3.bf16.msra.mxu1 %v345_v2  ;;  %v95_v8 = vpack.c.bf16 %v94_v7, %v94_v7  ;;  %v226_v11 = vsel %vm224_vm2, %v348_v9, 0  ;;  %v207_v12 = vpack.c.bf16 %v206_v10, %v206_v10  ;;  %v303_v23 = vld [vmem:[%s642_s6] ss:$0 sm:$0xff]  ;;  %s284_s16 = sshll.u32 %s498_s15, 4  ;;  %s285_s16 = int_to_ptr.vmem [resolvable:$true] %s284_s16 }
  0x5d   :  { %314 = vmatprep.subr.bf16.mxu0 %v496_v0  ;;  %326 = vmatprep.subr.bf16.mxu1 %v496_v0  ;;  %s459_s17 = scalar_lea.vmem %s285_s16, 128  ;;  %p464_p13 = scmp.lt.s32.totalorder %s285_s16, %s285_s16 }
  0x5e   :  { %p460_p12 = scmp.ne.s32.totalorder %s285_s16, %s459_s17  ;;  %p465_p0 = scmp.lt.s32.totalorder %s459_s17, %s459_s17 }
  0x5f   :  { %323 = vmatmul.mubr.msk.bf16.vlgmr.msra.gmra.mrb[0].mxu1 %vm162_vm1, %v91_v4 }
  0x60   :  { %315 = vmatpush3.bf16.msra.mxu0 %v346_v5  ;;  %327 = vmatpush3.bf16.msra.mxu1 %v347_v6  ;;  %p466_p1 = por %p465_p0, %p464_p13 }
  0x61   :  { %330 = vmatprep.mubr.msk.bf16.mxu1 %vm497_vm0, %v496_v0  ;;  %328 = vmatprep.subr.bf16.mxu1 %v496_v0 }
  0x62   :  { %p467_p2 = pnand %p466_p1, %p460_p12 }
  0x63   :  { %317 = vmatmul.mubr.msk.bf16.vlgmr.msra.gmra.mrb[0].mxu0 %vm112_vm3, %v95_v8 }
  0x64   :  { %329 = vmatpush3.bf16.msra.mxu1 %v226_v11 }
  0x67   :  { %331 = vmatmul.mubr.msk.bf16.vlgmr.msra.gmra.mrb[4].mxu1 %vm220_vm4, %v207_v12 }
 0x132   :  { %v200_v13 = vpop.f32.mrb[0].mxu1 }
 0x133   :  { %v324_v14 = vpop.f32.mrb[1].mxu1 }
 0x134   :  { %v203_v15 = vpop.f32.mrb[2].mxu1 }
 0x135   :  { %v325_v16 = vpop.f32.mrb[3].mxu1 }
 0x136   :  { %v150_v17 = vpop.f32.mrb[0].mxu0 }
 0x137   :  { %v201_v18 = vadd.f32 %v200_v13, %v150_v17  ;;  %v318_v19 = vpop.f32.mrb[1].mxu0 }
 0x138   :  { %v153_v20 = vpop.f32.mrb[2].mxu0 }
 0x139   :  { %v319_v21 = vpop.f32.mrb[3].mxu0 }
 0x13a   :  { %v262_v22 = vpop.f32.mrb[4].mxu1 }
 0x13b   :  { %v268_v24 = vadd.f32 %v262_v22, %v201_v18  ;;  %v332_v25 = vpop.f32.mrb[5].mxu1 }
 0x13c   :  { %v265_v26 = vpop.f32.mrb[6].mxu1 }
 0x13d   :  { %v276_v27 = vadd.f32 %v303_v23, %v268_v24  ;;  %v333_v28 = vpop.f32.mrb[7].mxu1 }
 0x13f   :  { %277 = vst [vmem:[#allocation11] sm:$0xff] %v276_v27 }
 0x140   :  { %470 = shalt.err (!%p467_p2)
}
 0x141   :  { %s471_s6 = scalar_lea.hbm %s643_s7, 128 }
 0x142   :  { %p472_p3 = scmp.ne.s32.totalorder %s643_s7, %s471_s6  ;;  %p475_p4 = scmp.lt.u32.totalorder %s471_s6, %s643_s7 }
 0x144   :  { %p477_p5 = pnand %p475_p4, %p472_p3 }
 0x146   :  { %480 = shalt.err (!%p477_p5)
}
 0x147   :  { %287 = dma.vmem_to_hbm [thread:$0]  %s285_s16, 128, %s643_s7, [#allocation4]  }
 0x148   :  { %487 = dma.done.wait [#allocation4], 128  }
 0x149   :  { %488 = vsyncadd [#allocation4], 4294967168 }
 0x14a   :  { %291 = vsyncpa [#allocation3], 1 }
 0x14b   :  { %292 = vsyncpa [#allocation6], 1 }
 0x14c   :  { %293 = vsyncpa [#allocation9], 1 }
 0x14d   :  { %294 = vsyncpa [#allocation4], 1 }

</bundles_post_ra>
